<compile_context>
chip_gen: v5e
topology: v5e:2x2
jax: 0.10.0
libtpu: 0.0.40
codegen_flags: <defaults>
</compile_context>

<pallas_src>
import jax
import jax.numpy as jnp
from jax import lax
from jax.experimental import pallas as pl
from jax.experimental.pallas import tpu as pltpu


def _round_up(x, m):
    return ((x + m - 1) // m) * m


# ----------------------------------------------------------------------------
# Pallas kernel: conv-as-GEMM + bias + ChannelNorm2d + activation + FiLM
# ----------------------------------------------------------------------------
def _make_conv_block_kernel(*, c_out, eps, act, use_cn, use_film):
    def kernel(*refs):
        pat_ref, w_ref, b_ref = refs[0], refs[1], refs[2]
        i = 3
        if use_cn:
            gcn_ref, bcn_ref = refs[i], refs[i + 1]
            i += 2
        if use_film:
            gf_ref, bf_ref = refs[i], refs[i + 1]
            i += 2
        o_ref = refs[i]

        p = pat_ref[0]                                     # (K, TR), lanes = spatial
        # Conv as MXU GEMM; accumulate in f32 even if operands were cast to bf16.
        y = jnp.dot(w_ref[...], p, preferred_element_type=jnp.float32)  # (C_out, TR)
        y = y + b_ref[...]                                 # (C_out, 1) bcast over lanes

        if use_cn:
            # ChannelNorm2d: stats across channels (sublane axis), single pass.
            # Matches PyTorch: sum((y-mean)^2)/(C-1), eps added OUTSIDE the sqrt.
            mean = jnp.mean(y, axis=0, keepdims=True)      # (1, TR)
            mean_sq = jnp.mean(y * y, axis=0, keepdims=True)
            var = (mean_sq - mean * mean) * (c_out / (c_out - 1.0))
            var = jnp.maximum(var, 0.0)                    # guard fp cancellation
            denom = jnp.sqrt(var) + eps
            inv = pl.reciprocal(denom, approx=True)        # EUP slot (no divide)
            inv = inv * (2.0 - denom * inv)                # 1 Newton step -> ~f32 exact
            y = (y - mean) * inv
            y = y * gcn_ref[...] + bcn_ref[...]            # (C_out,1) affine

        if act == "relu":
            y = jnp.maximum(y, 0.0)
        elif act == "sigmoid":
            t = 1.0 + jnp.exp(-y)
            inv = pl.reciprocal(t, approx=True)
            y = inv * (2.0 - t * inv)

        if use_film:
            y = y * gf_ref[0] + bf_ref[0]                  # per-(batch, channel) FiLM

        o_ref[0] = y.astype(o_ref.dtype)

    return kernel


def conv_block(x, weight, bias, *, stride, padding,
               gamma_cn=None, beta_cn=None, gamma_film=None, beta_film=None,
               act="relu", eps=1e-3, max_row_tile=2048, matmul_dtype=None):
    """Conv2d (+ChannelNorm2d +activation +FiLM) as a single Pallas kernel.

    x: (N, C_in, H, W) f32.  weight: (C_out, C_in, kh, kw).  Returns NCHW f32.
    Set matmul_dtype=jnp.bfloat16 on v6e/v7x to halve GEMM-operand DMA bytes
    (accumulation stays f32); default keeps f32 for exact parity checks.
    """
    N, C_in, H, W = x.shape
    C_out, _, kh, kw = weight.shape
    H_out = (H + 2 * padding - kh) // stride + 1
    W_out = (W + 2 * padding - kw) // stride + 1
    HW = H_out * W_out
    K = C_in * kh * kw
    use_cn = gamma_cn is not None
    use_film = gamma_film is not None

    # ---- im2col glue (channel-major (N, K, HW): no wrapper transposes) ----
    # TODO(synk): patch extraction could move inside the kernel (halo DMA from a
    # raw HBM ref) to remove the kh*kw/stride^2 HBM read amplification entirely.
    xp = jnp.pad(x, ((0, 0), (0, 0), (padding, padding), (padding, padding))) if padding else x
    cols = []
    for i in range(kh):
        for j in range(kw):
            cols.append(xp[:, :, i:i + (H_out - 1) * stride + 1:stride,
                              j:j + (W_out - 1) * stride + 1:stride])
    pat = jnp.stack(cols, axis=2).reshape(N, K, HW)        # feature order (C_in, kh, kw)
    w2d = weight.reshape(C_out, K)
    if matmul_dtype is not None:
        pat = pat.astype(matmul_dtype)
        w2d = w2d.astype(matmul_dtype)

    # ---- row-tile sizing from an explicit VMEM budget (v7x: 64 MiB physical) ----
    bpe = jnp.dtype(pat.dtype).itemsize
    def _vmem_bytes(rt):
        return (2 * K * rt * bpe          # double-buffered patch tile
                + 2 * C_out * rt * 4      # double-buffered f32 output tile
                + C_out * K * bpe         # resident weight
                + 8 * C_out * 4)          # small affine operands
    VMEM_BUDGET = 24 * 1024 * 1024
    row_tile = min(_round_up(HW, 128), _round_up(max_row_tile, 128))
    while row_tile > 128 and _vmem_bytes(row_tile) > VMEM_BUDGET:
        row_tile -= 128
    HW_pad = _round_up(HW, row_tile)
    if HW_pad != HW:
        pat = jnp.pad(pat, ((0, 0), (0, 0), (0, HW_pad - HW)))

    operands = [pat, w2d, bias.reshape(C_out, 1).astype(jnp.float32)]
    in_specs = [
        pl.BlockSpec((1, K, row_tile), lambda n, r: (n, 0, r)),
        pl.BlockSpec((C_out, K), lambda n, r: (0, 0)),
        pl.BlockSpec((C_out, 1), lambda n, r: (0, 0)),
    ]
    if use_cn:
        operands += [gamma_cn.reshape(C_out, 1), beta_cn.reshape(C_out, 1)]
        in_specs += [pl.BlockSpec((C_out, 1), lambda n, r: (0, 0)),
                     pl.BlockSpec((C_out, 1), lambda n, r: (0, 0))]
    if use_film:
        operands += [gamma_film.reshape(N, C_out, 1), beta_film.reshape(N, C_out, 1)]
        in_specs += [pl.BlockSpec((1, C_out, 1), lambda n, r: (n, 0, 0)),
                     pl.BlockSpec((1, C_out, 1), lambda n, r: (n, 0, 0))]

    kernel = _make_conv_block_kernel(c_out=C_out, eps=eps, act=act,
                                     use_cn=use_cn, use_film=use_film)

    out = pl.pallas_call(
        kernel,
        out_shape=jax.ShapeDtypeStruct((N, C_out, HW_pad), jnp.float32),
        grid_spec=pltpu.PrefetchScalarGridSpec(
            num_scalar_prefetch=0,
            grid=(N, HW_pad // row_tile),
            in_specs=in_specs,
            out_specs=pl.BlockSpec((1, C_out, row_tile), lambda n, r: (n, 0, r)),
        ),
        compiler_params=pltpu.CompilerParams(
            dimension_semantics=("parallel", "parallel"),
            vmem_limit_bytes=32 * 1024 * 1024),
    )(*operands)

    return out[:, :, :HW].reshape(N, C_out, H_out, W_out)


# ----------------------------------------------------------------------------
# BitrateEstimator forward (version=0)
# ----------------------------------------------------------------------------
def feature_modulator(fm_in, mod):
    # Tiny (in_features=1) Linear layers -> plain-JAX glue.
    gamma = jax.nn.softplus(fm_in @ mod["wg"].T + mod["bg"])
    beta = fm_in @ mod["wb"].T + mod["bb"]
    return gamma, beta


def bitrate_estimator_forward(params, x, fm_in=None, *, eps=1e-3, matmul_dtype=None):
    out = x
    for li, blk in enumerate(params["conv_blocks"]):
        gamma = beta = None
        if params["modulators"] is not None and fm_in is not None:
            gamma, beta = feature_modulator(fm_in, params["modulators"][li])
        out = conv_block(out, blk["w"], blk["b"], stride=2, padding=0,
                         gamma_cn=blk["gamma_cn"], beta_cn=blk["beta_cn"],
                         gamma_film=gamma, beta_film=beta,
                         act="relu", eps=eps, matmul_dtype=matmul_dtype)
    ll = params["last_conv"]
    out = conv_block(out, ll["w"], ll["b"], stride=2, padding=0,
                     act="sigmoid", eps=eps, matmul_dtype=matmul_dtype)
    # version 0: Sigmoid -> AdaptiveAvgPool2d(1) -> mean over (C,1,1) -> *24
    # TODO(synk): version=1 MLP head and 'bn' normalization are not implemented
    # (module defaults are version=0, normalization='cn').
    return jnp.mean(out, axis=(1, 2, 3)) * 24.0


# ----------------------------------------------------------------------------
# Plain-JAX reference + demo
# ----------------------------------------------------------------------------
def _conv_block_ref(x, w, b, gcn, bcn, gamma, beta, act, eps):
    y = lax.conv_general_dilated(x, w, window_strides=(2, 2),
                                 padding=[(0, 0), (0, 0)],
                                 dimension_numbers=("NCHW", "OIHW", "NCHW"))
    y = y + b[None, :, None, None]
    if gcn is not None:
        mean = jnp.mean(y, axis=1, keepdims=True)
        var = jnp.sum((y - mean) ** 2, axis=1, keepdims=True) / (y.shape[1] - 1)
        y = (y - mean) / (jnp.sqrt(var) + eps)
        y = y * gcn[None, :, None, None] + bcn[None, :, None, None]
    if act == "relu":
        y = jnp.maximum(y, 0.0)
    elif act == "sigmoid":
        y = jax.nn.sigmoid(y)
    if gamma is not None:
        y = y * gamma[:, :, None, None] + beta[:, :, None, None]
    return y


def _reference_forward(params, x, fm_in=None, *, eps=1e-3):
    out = x
    for li, blk in enumerate(params["conv_blocks"]):
        gamma = beta = None
        if params["modulators"] is not None and fm_in is not None:
            gamma, beta = feature_modulator(fm_in, params["modulators"][li])
        out = _conv_block_ref(out, blk["w"], blk["b"], blk["gamma_cn"], blk["beta_cn"],
                              gamma, beta, "relu", eps)
    ll = params["last_conv"]
    out = _conv_block_ref(out, ll["w"], ll["b"], None, None, None, None, "sigmoid", eps)
    return jnp.mean(out, axis=(1, 2, 3)) * 24.0


def init_params(key, *, feature_modulation=True):
    conv_cfg = [(3, 32), (32, 64), (64, 128)]
    ki = iter(jax.random.split(key, 32))
    conv_blocks = []
    for ci, co in conv_cfg:
        conv_blocks.append(dict(
            w=jax.random.normal(next(ki), (co, ci, 3, 3), jnp.float32) / jnp.sqrt(ci * 9.0),
            b=jax.random.normal(next(ki), (co,), jnp.float32) * 0.1,
            gamma_cn=jnp.ones((co,), jnp.float32),     # ChannelNorm2d init
            beta_cn=jnp.zeros((co,), jnp.float32)))
    modulators = None
    if feature_modulation:
        modulators = []
        for _, co in conv_cfg:
            modulators.append(dict(
                wg=jax.random.normal(next(ki), (co, 1), jnp.float32) * 0.5,
                bg=jax.random.normal(next(ki), (co,), jnp.float32) * 0.1,
                wb=jax.random.normal(next(ki), (co, 1), jnp.float32) * 0.5,
                bb=jax.random.normal(next(ki), (co,), jnp.float32) * 0.1))
    last_conv = dict(
        w=jax.random.normal(next(ki), (256, 128, 3, 3), jnp.float32) / jnp.sqrt(128 * 9.0),
        b=jax.random.normal(next(ki), (256,), jnp.float32) * 0.1)
    return dict(conv_blocks=conv_blocks, modulators=modulators, last_conv=last_conv)


if __name__ == "__main__":
    key = jax.random.PRNGKey(0)
    kp, kx, kf = jax.random.split(key, 3)
    params = init_params(kp, feature_modulation=True)

    # Small shapes consistent with the module: 3 input channels; spatial 48
    # survives the four stride-2 valid 3x3 convs (48 -> 23 -> 11 -> 5 -> 2).
    N = 2
    x = jax.random.normal(kx, (N, 3, 48, 48), jnp.float32)
    fm_in = jax.random.normal(kf, (N, 1), jnp.float32)     # FeatureModulator input

    out = bitrate_estimator_forward(params, x, fm_in)
    out = jax.block_until_ready(out)

    ref = _reference_forward(params, x, fm_in)
    assert out.shape == (N,)
    assert bool(jnp.all(jnp.isfinite(out)))
    assert jnp.allclose(out, ref, atol=1e-3, rtol=1e-3), (out, ref)

    print("KERNEL_OK")
</pallas_src>

<mosaic_0001>
module attributes {stable_mosaic.version = 11 : i64} {
  func.func @kernel(%arg0: i32, %arg1: i32, %arg2: memref<1x27x640xf32, #tpu.memory_space<vmem>>, %arg3: memref<32x27xf32, #tpu.memory_space<vmem>>, %arg4: memref<32x1xf32, #tpu.memory_space<vmem>>, %arg5: memref<32x1xf32, #tpu.memory_space<vmem>>, %arg6: memref<32x1xf32, #tpu.memory_space<vmem>>, %arg7: memref<1x32x1xf32, #tpu.memory_space<vmem>>, %arg8: memref<1x32x1xf32, #tpu.memory_space<vmem>>, %arg9: memref<1x32x640xf32, #tpu.memory_space<vmem>>) attributes {dimension_semantics = [#tpu.dimension_semantics<parallel>, #tpu.dimension_semantics<parallel>], iteration_bounds = array<i64: 2, 1>, scalar_prefetch = 0 : i64, scratch_operands = 0 : i64, tpu.core_type = #tpu.core_type<tc>, window_params = [{transform_indices = @transform_0, window_bounds = array<i64: 1, 27, 640>}, {pipeline_mode = #tpu.pipeline_mode<synchronous>, transform_indices = @transform_1, window_bounds = array<i64: 32, 27>}, {pipeline_mode = #tpu.pipeline_mode<synchronous>, transform_indices = @transform_2, window_bounds = array<i64: 32, 1>}, {pipeline_mode = #tpu.pipeline_mode<synchronous>, transform_indices = @transform_3, window_bounds = array<i64: 32, 1>}, {pipeline_mode = #tpu.pipeline_mode<synchronous>, transform_indices = @transform_4, window_bounds = array<i64: 32, 1>}, {transform_indices = @transform_5, window_bounds = array<i64: 1, 32, 1>}, {transform_indices = @transform_6, window_bounds = array<i64: 1, 32, 1>}, {transform_indices = @transform_7, window_bounds = array<i64: 1, 32, 640>}]} {
    %c0 = arith.constant 0 : index
    %c0_0 = arith.constant 0 : index
    %c0_1 = arith.constant 0 : index
    %0 = vector.load %arg2[%c0, %c0_0, %c0_1] : memref<1x27x640xf32, #tpu.memory_space<vmem>>, vector<1x27x640xf32>
    %1 = vector.shape_cast %0 : vector<1x27x640xf32> to vector<27x640xf32>
    %c0_2 = arith.constant 0 : index
    %c0_3 = arith.constant 0 : index
    %2 = vector.load %arg3[%c0_2, %c0_3] : memref<32x27xf32, #tpu.memory_space<vmem>>, vector<32x27xf32>
    %cst = arith.constant dense<0.000000e+00> : vector<32x640xf32>
    %3 = tpu.matmul %2, %1, %cst {dimension_numbers = #tpu.dot_dimension_numbers<[1], [0], [0], [1], [0, 0, 1, 1], [], []>} : vector<32x27xf32>, vector<27x640xf32>, vector<32x640xf32> -> vector<32x640xf32>
    %c0_4 = arith.constant 0 : index
    %c0_5 = arith.constant 0 : index
    %4 = vector.load %arg4[%c0_4, %c0_5] : memref<32x1xf32, #tpu.memory_space<vmem>>, vector<32x1xf32>
    %5 = vector.broadcast %4 : vector<32x1xf32> to vector<32x640xf32>
    %6 = arith.addf %3, %5 : vector<32x640xf32>
    %cst_6 = arith.constant dense<0.000000e+00> : vector<640xf32>
    %7 = vector.multi_reduction <add>, %6, %cst_6 [0] : vector<32x640xf32> to vector<640xf32>
    %8 = vector.shape_cast %7 : vector<640xf32> to vector<1x640xf32>
    %cst_7 = arith.constant 3.200000e+01 : f32
    %9 = vector.broadcast %cst_7 : f32 to vector<1x640xf32>
    %10 = arith.divf %8, %9 : vector<1x640xf32>
    %11 = arith.mulf %6, %6 : vector<32x640xf32>
    %cst_8 = arith.constant dense<0.000000e+00> : vector<640xf32>
    %12 = vector.multi_reduction <add>, %11, %cst_8 [0] : vector<32x640xf32> to vector<640xf32>
    %13 = vector.shape_cast %12 : vector<640xf32> to vector<1x640xf32>
    %cst_9 = arith.constant 3.200000e+01 : f32
    %14 = vector.broadcast %cst_9 : f32 to vector<1x640xf32>
    %15 = arith.divf %13, %14 : vector<1x640xf32>
    %16 = arith.mulf %10, %10 : vector<1x640xf32>
    %17 = arith.subf %15, %16 : vector<1x640xf32>
    %cst_10 = arith.constant 1.03225803 : f32
    %18 = vector.broadcast %cst_10 : f32 to vector<1x640xf32>
    %19 = arith.mulf %17, %18 : vector<1x640xf32>
    %cst_11 = arith.constant 0.000000e+00 : f32
    %20 = vector.broadcast %cst_11 : f32 to vector<1x640xf32>
    %21 = arith.maximumf %19, %20 : vector<1x640xf32>
    %22 = math.sqrt %21 : vector<1x640xf32>
    %cst_12 = arith.constant 1.000000e-03 : f32
    %23 = vector.broadcast %cst_12 : f32 to vector<1x640xf32>
    %24 = arith.addf %22, %23 : vector<1x640xf32>
    %25 = tpu.reciprocal %24 {approx = true} : vector<1x640xf32> -> vector<1x640xf32>
    %26 = arith.mulf %24, %25 : vector<1x640xf32>
    %cst_13 = arith.constant 2.000000e+00 : f32
    %27 = vector.broadcast %cst_13 : f32 to vector<1x640xf32>
    %28 = arith.subf %27, %26 : vector<1x640xf32>
    %29 = arith.mulf %25, %28 : vector<1x640xf32>
    %30 = vector.broadcast %10 : vector<1x640xf32> to vector<32x640xf32>
    %31 = arith.subf %6, %30 : vector<32x640xf32>
    %32 = vector.broadcast %29 : vector<1x640xf32> to vector<32x640xf32>
    %33 = arith.mulf %31, %32 : vector<32x640xf32>
    %c0_14 = arith.constant 0 : index
    %c0_15 = arith.constant 0 : index
    %34 = vector.load %arg5[%c0_14, %c0_15] : memref<32x1xf32, #tpu.memory_space<vmem>>, vector<32x1xf32>
    %35 = vector.broadcast %34 : vector<32x1xf32> to vector<32x640xf32>
    %36 = arith.mulf %33, %35 : vector<32x640xf32>
    %c0_16 = arith.constant 0 : index
    %c0_17 = arith.constant 0 : index
    %37 = vector.load %arg6[%c0_16, %c0_17] : memref<32x1xf32, #tpu.memory_space<vmem>>, vector<32x1xf32>
    %38 = vector.broadcast %37 : vector<32x1xf32> to vector<32x640xf32>
    %39 = arith.addf %36, %38 : vector<32x640xf32>
    %cst_18 = arith.constant 0.000000e+00 : f32
    %40 = vector.broadcast %cst_18 : f32 to vector<32x640xf32>
    %41 = arith.maximumf %39, %40 : vector<32x640xf32>
    %c0_19 = arith.constant 0 : index
    %c0_20 = arith.constant 0 : index
    %c0_21 = arith.constant 0 : index
    %42 = vector.load %arg7[%c0_19, %c0_20, %c0_21] : memref<1x32x1xf32, #tpu.memory_space<vmem>>, vector<1x32x1xf32>
    %43 = vector.shape_cast %42 : vector<1x32x1xf32> to vector<32x1xf32>
    %44 = vector.broadcast %43 : vector<32x1xf32> to vector<32x640xf32>
    %45 = arith.mulf %41, %44 : vector<32x640xf32>
    %c0_22 = arith.constant 0 : index
    %c0_23 = arith.constant 0 : index
    %c0_24 = arith.constant 0 : index
    %46 = vector.load %arg8[%c0_22, %c0_23, %c0_24] : memref<1x32x1xf32, #tpu.memory_space<vmem>>, vector<1x32x1xf32>
    %47 = vector.shape_cast %46 : vector<1x32x1xf32> to vector<32x1xf32>
    %48 = vector.broadcast %47 : vector<32x1xf32> to vector<32x640xf32>
    %49 = arith.addf %45, %48 : vector<32x640xf32>
    %c0_25 = arith.constant 0 : index
    %c0_26 = arith.constant 0 : index
    %c0_27 = arith.constant 0 : index
    %50 = vector.load %arg9[%c0_25, %c0_26, %c0_27] : memref<1x32x640xf32, #tpu.memory_space<vmem>>, vector<1x32x640xf32>
    %51 = vector.shape_cast %50 : vector<1x32x640xf32> to vector<32x640xf32>
    %52 = vector.shape_cast %49 : vector<32x640xf32> to vector<1x32x640xf32>
    tpu.vector_store %arg9[%c0_25, %c0_26, %c0_27], %52 {strides = array<i32>} : memref<1x32x640xf32, #tpu.memory_space<vmem>>, vector<1x32x640xf32>,
    return
  }
  func.func @transform_0(%arg0: i32, %arg1: i32) -> (i32, i32, i32) {
    %c0_i32 = arith.constant 0 : i32
    %c0_i32_0 = arith.constant 0 : i32
    return %arg0, %c0_i32, %arg1 : i32, i32, i32
  }
  func.func @transform_1(%arg0: i32, %arg1: i32) -> (i32, i32) {
    %c0_i32 = arith.constant 0 : i32
    %c0_i32_0 = arith.constant 0 : i32
    %c0_i32_1 = arith.constant 0 : i32
    return %c0_i32, %c0_i32_0 : i32, i32
  }
  func.func @transform_2(%arg0: i32, %arg1: i32) -> (i32, i32) {
    %c0_i32 = arith.constant 0 : i32
    %c0_i32_0 = arith.constant 0 : i32
    %c0_i32_1 = arith.constant 0 : i32
    return %c0_i32, %c0_i32_0 : i32, i32
  }
  func.func @transform_3(%arg0: i32, %arg1: i32) -> (i32, i32) {
    %c0_i32 = arith.constant 0 : i32
    %c0_i32_0 = arith.constant 0 : i32
    %c0_i32_1 = arith.constant 0 : i32
    return %c0_i32, %c0_i32_0 : i32, i32
  }
  func.func @transform_4(%arg0: i32, %arg1: i32) -> (i32, i32) {
    %c0_i32 = arith.constant 0 : i32
    %c0_i32_0 = arith.constant 0 : i32
    %c0_i32_1 = arith.constant 0 : i32
    return %c0_i32, %c0_i32_0 : i32, i32
  }
  func.func @transform_5(%arg0: i32, %arg1: i32) -> (i32, i32, i32) {
    %c0_i32 = arith.constant 0 : i32
    %c0_i32_0 = arith.constant 0 : i32
    %c0_i32_1 = arith.constant 0 : i32
    return %arg0, %c0_i32, %c0_i32_0 : i32, i32, i32
  }
  func.func @transform_6(%arg0: i32, %arg1: i32) -> (i32, i32, i32) {
    %c0_i32 = arith.constant 0 : i32
    %c0_i32_0 = arith.constant 0 : i32
    %c0_i32_1 = arith.constant 0 : i32
    return %arg0, %c0_i32, %c0_i32_0 : i32, i32, i32
  }
  func.func @transform_7(%arg0: i32, %arg1: i32) -> (i32, i32, i32) {
    %c0_i32 = arith.constant 0 : i32
    %c0_i32_0 = arith.constant 0 : i32
    return %arg0, %c0_i32, %arg1 : i32, i32, i32
  }
}

</mosaic_0001>

<bundles_post_ra>
// kernel: tpu_custom_call.1
= control target key start
LH: loop header
LB: loop body
LE: loop exit
PB: predicated region body
PF: predicated region fallthrough
CT: control target
= control target key end

     0   :  { %12 = vsyncpa [#allocation3], 0  ;;  %s2071_s0 = inlined_call_operand.vmem [shape: f32[2,27,640], index: 0, kind: input, shape index: {}]   ;;  %s2072_s1 = inlined_call_operand.vmem [shape: f32[32,27], index: 1, kind: input, shape index: {}]   ;;  %s2073_s2 = inlined_call_operand.vmem [shape: f32[32,1], index: 2, kind: input, shape index: {}]   ;;  %s2074_s3 = inlined_call_operand.vmem [shape: f32[32,1], index: 3, kind: input, shape index: {}]   ;;  %s2075_s4 = inlined_call_operand.vmem [shape: f32[32,1], index: 4, kind: input, shape index: {}]   ;;  %s2076_s5 = inlined_call_operand.vmem [shape: f32[2,32,1], index: 5, kind: input, shape index: {}]   ;;  %s2077_s6 = inlined_call_operand.vmem [shape: f32[2,32,1], index: 6, kind: input, shape index: {}]   ;;  %s2078_s7 = inlined_call_operand.hbm [shape: f32[2,32,640], index: 7, kind: output, shape index: {}]  }
   0x1   :  { %14 = vsyncpa [#allocation3 + $0x1], 0  ;;  %s1442_s24 = smov 0   ;;  %s1444_s25 = smov 0  }
   0x2   :  { %s1446_s26 = smov 0   ;;  %s1448_s27 = smov 0  }
   0x3   :  { %s1450_s28 = smov 0   ;;  %s1452_s29 = smov 0  }
   0x4 LB: > { %s1179_s30 = sadd.s32 4294967295, %s1396_s29   ;;  %s1180_s8 = sadd.s32 4294967294, %s1396_s29   ;;  %s1396_s29 = sphi %s1452_s29, %s20_s29   ;;  %s1392_s28 = sphi %s1450_s28, %s2085_s28   ;;  %s1388_s27 = sphi %s1448_s27, %s2084_s27   ;;  %s1384_s26 = sphi %s1446_s26, %s2083_s26   ;;  %s1380_s25 = sphi %s1444_s25, %s2082_s25   ;;  %s1376_s24 = sphi %s1442_s24, %s2081_s24  }
   0x5   : > { %s32_s9 = sadd.s32 1, %s1392_s28  ;;  %s205_s10 = sadd.s32 1, %s1384_s26 }
   0x6   : > { %p34_p0 = scmp.ge.s32.totalorder %s32_s9, 2  ;;  %p215_p1 = scmp.ne.s32.totalorder %s1384_s26, %s1380_s25 }
   0x7   : > { %p216_p2 = scmp.eq.s32.totalorder %s1179_s30, 1  ;;  %p221_p3 = scmp.ne.s32.totalorder %s1380_s25, %s1376_s24 }
   0x8   : > { %s2087_s9 = smov (%p34_p0, %s32_s9), 0  ;;  %p222_p5 = scmp.eq.s32.totalorder %s1180_s8, 1 }
   0x9   : > { %p1482_p4 = por %p216_p2, %p215_p1  ;;  %s200_s12 = ssub.s32 %s1392_s28, %s2087_s9 }
   0xa   : > { %p1183_p6 = scmp.ge.s32.totalorder %s1396_s29, 1  ;;  %p203_p7 = scmp.eq.s32.totalorder %s200_s12, 0 }
   0xb   : > { %p1489_p8 = por %p222_p5, %p221_p3  ;;  %p281_p9 = scmp.lt.s32.totalorder %s1396_s29, 3 }
   0xc   : > { %s1495_s14 = scalar_select %p203_p7, %s1384_s26, %s205_s10  }
   0xd   : > { %p282_p10 = pnand %p1183_p6, %p281_p9 }
   0xe   : > { %p328_p11 = scmp.lt.s32.totalorder (!%p282_p10), %s1388_s27, 1 }
   0xf   : > { %285 = sbr.rel (%p282_p10) target bundleno = 300 (0x12c), region = 48 }
  0x14   : > { %v372_v0 = vld [vmem:[%s2073_s2] sm:$0xff]  ;;  %v374_v1 = vld [vmem:[%s2073_s2 + $0x10] sm:$0xff]  ;;  %v1398_v2 = vmov 0   ;;  %s1505_s19 = scalar_select %p328_p11, %s1388_s27, 1  ;;  %vm409_vm0 = vcmask 1042432   ;;  %v373_v5 = vld [vmem:[%s2073_s2 + $0x8] sm:$0xff] }
  0x15   : > { %1293 = vset.pattern.permute.xlu0 %v1398_v2  ;;  %1294 = vset.pattern.permute.xlu1 %v1398_v2  ;;  %v368_v8 = vld [vmem:[%s2072_s1] sm:$0xff]  ;;  %vm396_vm1 = vcmask 220160   ;;  %v1530_v9 = vld [vmem:[%s2072_s1 + $0x8] sm:$0xff]  ;;  %v1535_v10 = vld [vmem:[%s2072_s1 + $0x10] sm:$0xff]  ;;  %v1399_v47 = vmov 32.0  }
  0x16   : > { %378 = vperm.xlu0 %1293, %v372_v0   ;;  %388 = vperm.xlu1 %1294, %v374_v1   ;;  %s1232_s20 = smul.u32 160, %s1505_s19  ;;  %v1540_v11 = vld [vmem:[%s2072_s1 + $0x18] sm:$0xff]  ;;  %v844_v23 = vld [vmem:[%s2074_s3 + $0x10] sm:$0xff]  ;;  %v887_v31 = vld [vmem:[%s2075_s4 + $0x8] sm:$0xff]  ;;  %1296 = vrcp.f32 %v1399_v47 }
  0x17   : > { %1295 = vset.pattern.permute.xlu2 %v1398_v2  ;;  %v375_v14 = vld [vmem:[%s2073_s2 + $0x18] sm:$0xff]  ;;  %v842_v32 = vld [vmem:[%s2074_s3] sm:$0xff]  ;;  %v888_v33 = vld [vmem:[%s2075_s4 + $0x10] sm:$0xff] }
  0x18   : > { %s1511_s23 = scalar_lea.vmem %s2071_s0, %s1232_s20  ;;  %v845_v30 = vld [vmem:[%s2074_s3 + $0x18] sm:$0xff]  ;;  %848 = vperm.xlu2 %1295, %v842_v32   ;;  %s1217_s20 = sshll.u32 %s1505_s19, 5  ;;  %v843_v34 = vld [vmem:[%s2074_s3 + $0x8] sm:$0xff]  ;;  %v886_v37 = vld [vmem:[%s2075_s4] sm:$0xff] }
  0x19   : > { %v363_v3 = vld [vmem:[%s1511_s23 + $0x78] sm:$0x7]  ;;  %v358_v4 = vld [vmem:[%s1511_s23 + $0x50] sm:$0xff]  ;;  %v353_v6 = vld [vmem:[%s1511_s23 + $0x28] sm:$0xff]  ;;  %s1595_s10 = scalar_lea.vmem %s2076_s5, %s1217_s20  ;;  %s346_s18 = scalar_lea.vmem %s2077_s6, %s1217_s20 }
  0x1a   : > { %1189 = vmatpush.msk.msra.mxu0 %vm409_vm0, %v363_v3  ;;  %1219 = vmatpush.msk.msra.mxu1 %vm409_vm0, %v363_v3  ;;  %v348_v7 = vld [vmem:[%s1511_s23] sm:$0xff]  ;;  %v365_v12 = vld [vmem:[%s1511_s23 + $0x88] sm:$0x7]  ;;  %v366_v13 = vld [vmem:[%s1511_s23 + $0x90] sm:$0x7]  ;;  %s324_s20 = sand.u32 1, %s1380_s25  }
  0x1b   : > { %1220 = vmatpush.msk.msra.mxu2 %vm409_vm0, %v363_v3  ;;  %1221 = vmatpush.msk.msra.mxu3 %vm409_vm0, %v363_v3  ;;  %v364_v15 = vld [vmem:[%s1511_s23 + $0x80] sm:$0x7]  ;;  %v367_v16 = vld [vmem:[%s1511_s23 + $0x98] sm:$0x7]  ;;  %v361_v18 = vld [vmem:[%s1511_s23 + $0x68] sm:$0xff]  ;;  %s1859_s30 = smul.u32 160, %s324_s20 }
  0x1c   : > { %438 = vmatpush.msra.mxu0 %v358_v4  ;;  %1222 = vmatpush.msra.mxu1 %v358_v4  ;;  %v360_v17 = vld [vmem:[%s1511_s23 + $0x60] sm:$0xff]  ;;  %v359_v19 = vld [vmem:[%s1511_s23 + $0x58] sm:$0xff]  ;;  %v362_v20 = vld [vmem:[%s1511_s23 + $0x70] sm:$0xff]  ;;  %v1297_v53 = vpop.eup %1296 }
  0x1d   : > { %1223 = vmatpush.msra.mxu2 %v358_v4  ;;  %1224 = vmatpush.msra.mxu3 %v358_v4  ;;  %v355_v21 = vld [vmem:[%s1511_s23 + $0x38] sm:$0xff]  ;;  %v356_v22 = vld [vmem:[%s1511_s23 + $0x40] sm:$0xff]  ;;  %v354_v24 = vld [vmem:[%s1511_s23 + $0x30] sm:$0xff]  ;;  %v616_v58 = vmul.f32 32.0, %v1297_v53  ;;  %vm620_vm2 = vweird.f32 %v1297_v53  ;;  %s1895_s8 = scalar_lea.vmem [#allocation2], %s1859_s30  ;;  %s1338_s30 = scalar_lea.hbm %s2078_s7, 320 }
  0x1e   : > { %383 = vperm.xlu0 %1293, %v373_v5   ;;  %439 = vmatpush.msra.mxu0 %v353_v6  ;;  %v357_v25 = vld [vmem:[%s1511_s23 + $0x48] sm:$0xff]  ;;  %v350_v26 = vld [vmem:[%s1511_s23 + $0x10] sm:$0xff]  ;;  %v351_v27 = vld [vmem:[%s1511_s23 + $0x18] sm:$0xff]  ;;  %s1073_s19 = sshll.u32 %s1895_s8, 4  ;;  %s1074_s19 = int_to_ptr.vmem [resolvable:$true] %s1073_s19 }
  0x1f   : > { %1225 = vmatpush.msra.mxu1 %v353_v6  ;;  %1226 = vmatpush.msra.mxu2 %v353_v6  ;;  %v349_v28 = vld [vmem:[%s1511_s23 + $0x8] sm:$0xff]  ;;  %v352_v29 = vld [vmem:[%s1511_s23 + $0x20] sm:$0xff]  ;;  %v953_v38 = vld [vmem:[%s1595_s10 + $0x18] sm:$0xff]  ;;  %v617_v2 = vsub.f32 1.0, %v616_v58  ;;  %s1059_s23 = scalar_lea.sflag [#allocation3], %s324_s20 }
  0x20   : > { %1227 = vmatpush.msra.mxu3 %v353_v6  ;;  %440 = vmatpush.msra.mxu0 %v348_v7  ;;  %v950_v35 = vld [vmem:[%s1595_s10] sm:$0xff]  ;;  %v951_v36 = vld [vmem:[%s1595_s10 + $0x8] sm:$0xff]  ;;  %v889_v40 = vld [vmem:[%s2075_s4 + $0x18] sm:$0xff] }
  0x21   : > { %1228 = vmatpush.msra.mxu1 %v348_v7  ;;  %1229 = vmatpush.msra.mxu2 %v348_v7  ;;  %v994_v39 = vld [vmem:[%s346_s18] sm:$0xff]  ;;  %v996_v41 = vld [vmem:[%s346_s18 + $0x10] sm:$0xff]  ;;  %v997_v42 = vld [vmem:[%s346_s18 + $0x18] sm:$0xff] }
  0x22   : > { %1230 = vmatpush.msra.mxu3 %v348_v7  ;;  %1190 = vmatmul.msk.f32.vlgmr.msra.gmra.mxu0 %vm396_vm1, %v368_v8  ;;  %v952_v43 = vld [vmem:[%s1595_s10 + $0x10] sm:$0xff]  ;;  %v995_v44 = vld [vmem:[%s346_s18 + $0x8] sm:$0xff]  ;;  %s1233_s10 = smul.u32 160, %s1388_s27 }
  0x23   : > { %1191 = vmatmul.msk.f32.vlgmr.msra.gmra.mxu1 %vm396_vm1, %v1530_v9  ;;  %1192 = vmatmul.msk.f32.vlgmr.msra.gmra.mxu2 %vm396_vm1, %v1535_v10 }
  0x24   : > { %1193 = vmatmul.msk.f32.vlgmr.msra.gmra.mxu3 %vm396_vm1, %v1540_v11  ;;  %1199 = vmatpush.msk.msrb.mxu2 %vm409_vm0, %v365_v12  ;;  %s1072_s27 = scalar_lea.hbm %s2078_s7, %s1233_s10 }
  0x25   : > { %1204 = vmatpush.msk.msrb.mxu3 %vm409_vm0, %v366_v13  ;;  %393 = vperm.xlu1 %1294, %v375_v14   ;;  %s1075_s16 = sshll.u32 %s1072_s27, 4  ;;  %s1076_s16 = int_to_ptr.hbm [resolvable:$true] %s1075_s16 }
  0x26   : > { %1194 = vmatpush.msk.msrb.mxu1 %vm409_vm0, %v364_v15  ;;  %1209 = vmatpush.msk.msrb.mxu0 %vm409_vm0, %v367_v16  ;;  %s1332_s17 = sshra.s32 %s1076_s16, 4  ;;  %s1333_s17 = int_to_ptr.hbm [resolvable:$true] %s1332_s17 }
  0x27   : > { %496 = vmatpush.msrb.mxu2 %v360_v17  ;;  %525 = vmatpush.msrb.mxu3 %v361_v18  ;;  %s1334_s18 = scalar_lea.hbm %s1333_s17, 160  ;;  %p1339_p1 = scmp.lt.s32.totalorder %s1333_s17, %s2078_s7 }
  0x28   : > { %467 = vmatpush.msrb.mxu1 %v359_v19  ;;  %554 = vmatpush.msrb.mxu0 %v362_v20  ;;  %p1335_p12 = scmp.ne.s32.totalorder %s1333_s17, %s1334_s18  ;;  %p1340_p2 = scmp.lt.s32.totalorder %s1338_s30, %s1334_s18 }
  0x29   : > { %497 = vmatpush.msrb.mxu2 %v355_v21  ;;  %526 = vmatpush.msrb.mxu3 %v356_v22 }
  0x2a   : > { %858 = vperm.xlu0 %1293, %v844_v23   ;;  %468 = vmatpush.msrb.mxu1 %v354_v24  ;;  %p1336_p13 = pnand %p1335_p12, %p1482_p4  ;;  %p1341_p3 = por %p1340_p2, %p1339_p1 }
  0x2b   : > { %555 = vmatpush.msrb.mxu0 %v357_v25  ;;  %498 = vmatpush.msrb.mxu2 %v350_v26 }
  0x2c   : > { %527 = vmatpush.msrb.mxu3 %v351_v27  ;;  %469 = vmatpush.msrb.mxu1 %v349_v28  ;;  %p1337_p0 = pneg %p1336_p13 }
  0x2d   : > { %556 = vmatpush.msrb.mxu0 %v352_v29  ;;  %1195 = vmatmul.msk.f32.vlgmr.msrb.gmra.mxu1 %vm396_vm1, %v368_v8 }
  0x2e   : > { %1200 = vmatmul.msk.f32.vlgmr.msrb.gmra.mxu2 %vm396_vm1, %v368_v8  ;;  %1205 = vmatmul.msk.f32.vlgmr.msrb.gmra.mxu3 %vm396_vm1, %v368_v8  ;;  %p1342_p5 = pnand %p1341_p3, %p1337_p0 }
  0x2f   : > { %1210 = vmatmul.msk.f32.vlgmr.msrb.gmra.mxu0 %vm396_vm1, %v368_v8  ;;  %863 = vperm.xlu1 %1294, %v845_v30  }
  0x30   : > { %853 = vperm.xlu2 %1295, %v843_v34  }
  0x32   : > { %897 = vperm.xlu0 %1293, %v887_v31  }
  0x35   : > { %1196 = vmatmul.msk.f32.gmra.mxu1 %vm396_vm1, %v1530_v9 }
  0x36   : > { %1201 = vmatmul.msk.f32.gmra.mxu2 %vm396_vm1, %v1530_v9  ;;  %1206 = vmatmul.msk.f32.gmra.mxu3 %vm396_vm1, %v1530_v9 }
  0x37   : > { %1211 = vmatmul.msk.f32.gmra.mxu0 %vm396_vm1, %v1530_v9  ;;  %902 = vperm.xlu1 %1294, %v888_v33  }
  0x38   : > { %892 = vperm.xlu2 %1295, %v886_v37  }
  0x3a   : > { %956 = vperm.xlu0 %1293, %v950_v35  }
  0x3d   : > { %1197 = vmatmul.msk.f32.gmra.mxu1 %vm396_vm1, %v1535_v10 }
  0x3e   : > { %1202 = vmatmul.msk.f32.gmra.mxu2 %vm396_vm1, %v1535_v10  ;;  %1207 = vmatmul.msk.f32.gmra.mxu3 %vm396_vm1, %v1535_v10 }
  0x3f   : > { %1212 = vmatmul.msk.f32.gmra.mxu0 %vm396_vm1, %v1535_v10  ;;  %961 = vperm.xlu1 %1294, %v951_v36   ;;  %v618_v10 = vmul.f32 %v1297_v53, %v617_v2 }
  0x40   : > { %907 = vperm.xlu2 %1295, %v889_v40  }
  0x41   : > { %v619_v16 = vadd.f32 %v1297_v53, %v618_v10 }
  0x42   : > { %971 = vperm.xlu0 %1293, %v953_v38  }
  0x43   : > { %v1666_v24 = vsel %vm620_vm2, %v1297_v53, %v619_v16 }
  0x45   : > { %1198 = vmatmul.msk.f32.gmra.mxu1 %vm396_vm1, %v1540_v11 }
  0x46   : > { %1203 = vmatmul.msk.f32.gmra.mxu2 %vm396_vm1, %v1540_v11  ;;  %1208 = vmatmul.msk.f32.gmra.mxu3 %vm396_vm1, %v1540_v11 }
  0x47   : > { %1213 = vmatmul.msk.f32.gmra.mxu0 %vm396_vm1, %v1540_v11  ;;  %1000 = vperm.xlu1 %1294, %v994_v39  }
  0x48   : > { %966 = vperm.xlu2 %1295, %v952_v43  }
  0x4a   : > { %1010 = vperm.xlu0 %1293, %v996_v41  }
  0x4f   : > { %1015 = vperm.xlu1 %1294, %v997_v42  }
  0x50   : > { %1005 = vperm.xlu2 %1295, %v995_v44  }
  0x88   : > { %v379_v45 = vpop.permute.xlu0 %378  ;;  %v1637_v46 = vpop.permute.xlu1 %388 }
  0x90   : > { %v1639_v49 = vpop.permute.xlu0 %383 }
  0x97   : > { %v1652_v59 = vpop.permute.xlu1 %393 }
  0x9f   : > { %v442_v48 = vpop.f32.mrf.mxu0 }
  0xa0   : > { %v1641_v50 = vadd.f32 %v442_v48, %v379_v45  ;;  %v445_v51 = vpop.f32.mrf.mxu1 }
  0xa1   : > { %v1644_v52 = vadd.f32 %v445_v51, %v1639_v49  ;;  %v1699_v51 = vpop.permute.xlu2 %848 }
  0xa2   : > { %v627_v54 = vmul.f32 %v1641_v50, %v1641_v50 }
  0xa3   : > { %v632_v55 = vmul.f32 %v1644_v52, %v1644_v52  ;;  %v570_v56 = vadd.f32 %v1644_v52, %v1641_v50 }
  0xa5   : > { %v647_v60 = vadd.f32 %v632_v55, %v627_v54 }
  0xa6   : > { %v448_v57 = vpop.f32.mrf.mxu2 }
  0xa7   : > { %v1655_v61 = vadd.f32 %v448_v57, %v1637_v46  ;;  %v451_v62 = vpop.f32.mrf.mxu3 }
  0xa8   : > { %v1658_v63 = vadd.f32 %v451_v62, %v1652_v59 }
  0xa9   : > { %v571_v0 = vadd.f32 %v570_v56, %v1655_v61  ;;  %v637_v1 = vmul.f32 %v1655_v61, %v1655_v61 }
  0xaa   : > { %v471_v3 = vpop.f32.mrf.mxu1  ;;  %v642_v6 = vmul.f32 %v1658_v63, %v1658_v63 }
  0xab   : > { %v648_v4 = vadd.f32 %v647_v60, %v637_v1  ;;  %v572_v5 = vadd.f32 %v571_v0, %v1658_v63  ;;  %v1677_v35 = vadd.f32 %v471_v3, %v379_v45 }
  0xac   : > { %v558_v7 = vpop.f32.mrf.mxu0 }
  0xad   : > { %v573_v8 = vrot.slane %v572_v5, 4  ;;  %v649_v9 = vadd.f32 %v648_v4, %v642_v6  ;;  %v1682_v39 = vadd.f32 %v558_v7, %v379_v45  ;;  %v628_v53 = vmul.f32 %v1677_v35, %v1677_v35 }
  0xaf   : > { %v574_v11 = vadd.f32 %v573_v8, %v572_v5  ;;  %v650_v12 = vrot.slane %v649_v9, 4  ;;  %v631_v56 = vmul.f32 %v1682_v39, %v1682_v39 }
  0xb1   : > { %v575_v13 = vrot.slane %v574_v11, 2  ;;  %v651_v14 = vadd.f32 %v650_v12, %v649_v9  ;;  %v500_v15 = vpop.f32.mrf.mxu2  ;;  %v529_v17 = vpop.f32.mrf.mxu3 }
  0xb2   : > { %v474_v18 = vpop.f32.mrf.mxu1  ;;  %v1684_v40 = vadd.f32 %v500_v15, %v379_v45  ;;  %v1686_v41 = vadd.f32 %v529_v17, %v379_v45 }
  0xb3   : > { %v576_v19 = vadd.f32 %v575_v13, %v574_v11  ;;  %v652_v20 = vrot.slane %v651_v14, 2  ;;  %v1675_v34 = vadd.f32 %v474_v18, %v1639_v49 }
  0xb4   : > { %v561_v21 = vpop.f32.mrf.mxu0  ;;  %v629_v57 = vmul.f32 %v1684_v40, %v1684_v40  ;;  %v630_v58 = vmul.f32 %v1686_v41, %v1686_v41 }
  0xb5   : > { %v577_v22 = vrot.slane %v576_v19, 1  ;;  %v653_v23 = vadd.f32 %v652_v20, %v651_v14  ;;  %v1680_v36 = vadd.f32 %v561_v21, %v1639_v49  ;;  %v633_v47 = vmul.f32 %v1675_v34, %v1675_v34 }
  0xb6   : > { %v579_v62 = vadd.f32 %v1675_v34, %v1677_v35 }
  0xb7   : > { %v578_v25 = vadd.f32 %v577_v22, %v576_v19  ;;  %v654_v26 = vrot.slane %v653_v23, 1  ;;  %v636_v45 = vmul.f32 %v1680_v36, %v1680_v36  ;;  %v656_v4 = vadd.f32 %v633_v47, %v628_v53 }
  0xb8   : > { %v606_v5 = vadd.f32 %v1680_v36, %v1682_v39 }
  0xb9   : > { %v1669_v27 = vmul.f32 %v1666_v24, %v578_v25  ;;  %v655_v28 = vadd.f32 %v654_v26, %v653_v23  ;;  %v503_v29 = vpop.f32.mrf.mxu2  ;;  %v532_v30 = vpop.f32.mrf.mxu3  ;;  %v683_v7 = vadd.f32 %v636_v45, %v631_v56 }
  0xba   : > { %v477_v31 = vpop.f32.mrf.mxu1  ;;  %v1689_v42 = vadd.f32 %v503_v29, %v1639_v49  ;;  %v1706_v54 = vadd.f32 %v532_v30, %v1639_v49  ;;  %v1753_v25 = vpop.permute.xlu1 %863 }
  0xbb   : > { %v692_v32 = vmul.f32 %v655_v28, %v1666_v24  ;;  %v697_v33 = vmul.f32 %v1669_v27, %v1669_v27  ;;  %v1692_v43 = vadd.f32 %v477_v31, %v1637_v46 }
  0xbc   : > { %v564_v37 = vpop.f32.mrf.mxu0  ;;  %v634_v0 = vmul.f32 %v1689_v42, %v1689_v42  ;;  %v635_v8 = vmul.f32 %v1706_v54, %v1706_v54  ;;  %v588_v12 = vadd.f32 %v1689_v42, %v1684_v40  ;;  %v597_v26 = vadd.f32 %v1706_v54, %v1686_v41 }
  0xbd   : > { %v702_v38 = vsub.f32 %v692_v32, %v697_v33  ;;  %v1697_v48 = vadd.f32 %v564_v37, %v1637_v46  ;;  %v638_v49 = vmul.f32 %v1692_v43, %v1692_v43  ;;  %v580_v9 = vadd.f32 %v579_v62, %v1692_v43 }
  0xbe   : > { %v665_v16 = vadd.f32 %v634_v0, %v629_v57  ;;  %v1757_v28 = vadd.f32 %v635_v8, %v630_v58  ;;  %v1767_v58 = vpop.permute.xlu0 %858 }
  0xbf   : > { %v707_v44 = vmul.f32 1.032258, %v702_v38  ;;  %v641_v6 = vmul.f32 %v1697_v48, %v1697_v48  ;;  %v607_v13 = vadd.f32 %v606_v5, %v1697_v48  ;;  %v657_v17 = vadd.f32 %v656_v4, %v638_v49  ;;  %v1760_v38 = vpop.permute.xlu2 %853 }
  0xc1   : > { %v1708_v55 = vmax.f32 %v707_v44, 0.0  ;;  %v506_v60 = vpop.f32.mrf.mxu2  ;;  %v535_v2 = vpop.f32.mrf.mxu3  ;;  %v684_v20 = vadd.f32 %v683_v7, %v641_v6 }
  0xc2   : > { %v1723_v1 = vadd.f32 %v506_v60, %v1637_v46  ;;  %v480_v3 = vpop.f32.mrf.mxu1  ;;  %v1745_v18 = vadd.f32 %v535_v2, %v1637_v46 }
  0xc3   : > { %1298 = vrsqrt.f32 %v1708_v55  ;;  %v1734_v10 = vadd.f32 %v480_v3, %v1652_v59  ;;  %vm724_vm3 = vcmp.eq.f32.partialorder %v1708_v55, inf  ;;  %vm726_vm4 = vcmp.eq.f32.partialorder %v1708_v55, 0.0 }
  0xc4   : > { %v567_v11 = vpop.f32.mrf.mxu0  ;;  %v639_v14 = vmul.f32 %v1723_v1, %v1723_v1  ;;  %v589_v46 = vadd.f32 %v588_v12, %v1723_v1  ;;  %v598_v53 = vadd.f32 %v597_v26, %v1745_v18 }
  0xc5   : > { %v1742_v15 = vadd.f32 %v567_v11, %v1652_v59  ;;  %v581_v19 = vadd.f32 %v580_v9, %v1734_v10  ;;  %v643_v21 = vmul.f32 %v1734_v10, %v1734_v10 }
  0xc6   : > { %v666_v31 = vadd.f32 %v665_v16, %v639_v14 }
  0xc7   : > { %v608_v22 = vadd.f32 %v607_v13, %v1742_v15  ;;  %v646_v23 = vmul.f32 %v1742_v15, %v1742_v15  ;;  %v582_v29 = vrot.slane %v581_v19, 4  ;;  %v658_v32 = vadd.f32 %v657_v17, %v643_v21 }
  0xc9   : > { %v1299_v30 = vpop.eup %1298  ;;  %v609_v33 = vrot.slane %v608_v22, 4  ;;  %v685_v37 = vadd.f32 %v684_v20, %v646_v23  ;;  %v509_v44 = vpop.f32.mrf.mxu2  ;;  %v583_v45 = vadd.f32 %v582_v29, %v581_v19  ;;  %v659_v60 = vrot.slane %v658_v32, 4 }
  0xca   : > { %v718_v47 = vmul.f32 %v1299_v30, %v1708_v55  ;;  %v1765_v56 = vadd.f32 %v509_v44, %v1652_v59  ;;  %v538_v57 = vpop.f32.mrf.mxu3 }
  0xcb   : > { %v610_v62 = vadd.f32 %v609_v33, %v608_v22  ;;  %v686_v0 = vrot.slane %v685_v37, 4  ;;  %v1770_v49 = vadd.f32 %v538_v57, %v1652_v59  ;;  %v584_v3 = vrot.slane %v583_v45, 2 }
  0xcc   : > { %v719_v2 = vmul.f32 %v1299_v30, %v718_v47  ;;  %v590_v4 = vadd.f32 %v589_v46, %v1765_v56  ;;  %v644_v5 = vmul.f32 %v1765_v56, %v1765_v56  ;;  %v660_v6 = vadd.f32 %v659_v60, %v658_v32 }
  0xcd   : > { %v611_v7 = vrot.slane %v610_v62, 2  ;;  %v687_v8 = vadd.f32 %v686_v0, %v685_v37  ;;  %v599_v9 = vadd.f32 %v598_v53, %v1770_v49  ;;  %v585_v12 = vadd.f32 %v584_v3, %v583_v45  ;;  %v1777_v53 = vpop.permute.xlu1 %902 }
  0xce   : > { %v720_v11 = vmul.f32 0.5, %v719_v2  ;;  %v591_v13 = vrot.slane %v590_v4, 4  ;;  %v667_v14 = vadd.f32 %v666_v31, %v644_v5  ;;  %v661_v59 = vrot.slane %v660_v6, 2 }
  0xcf   : > { %v612_v16 = vadd.f32 %v611_v7, %v610_v62  ;;  %v688_v17 = vrot.slane %v687_v8, 2  ;;  %v600_v19 = vrot.slane %v599_v9, 4  ;;  %v586_v21 = vrot.slane %v585_v12, 1  ;;  %v1780_v62 = vpop.permute.xlu2 %892 }
  0xd0   : > { %v721_v20 = vsub.f32 1.5, %v720_v11  ;;  %v592_v22 = vadd.f32 %v591_v13, %v590_v4  ;;  %v668_v23 = vrot.slane %v667_v14, 4  ;;  %v662_v26 = vadd.f32 %v661_v59, %v660_v6  ;;  %v1788_v4 = vpop.permute.xlu0 %897 }
  0xd1   : > { %v613_v46 = vrot.slane %v612_v16, 1  ;;  %v689_v29 = vadd.f32 %v688_v17, %v687_v8  ;;  %v601_v32 = vadd.f32 %v600_v19, %v599_v9  ;;  %v587_v37 = vadd.f32 %v586_v21, %v585_v12 }
  0xd2   : > { %v722_v33 = vmul.f32 %v1299_v30, %v721_v20  ;;  %v593_v44 = vrot.slane %v592_v22, 2  ;;  %v669_v47 = vadd.f32 %v668_v23, %v667_v14  ;;  %v727_v31 = vand.u32 2147483648, %v1708_v55 }
  0xd3   : > { %v663_v45 = vrot.slane %v662_v26, 1  ;;  %v614_v57 = vadd.f32 %v613_v46, %v612_v16  ;;  %v690_v60 = vrot.slane %v689_v29, 1  ;;  %v640_v2 = vmul.f32 %v1745_v18, %v1745_v18 }
  0xd4   : > { %v723_v0 = vmul.f32 %v722_v33, %v1708_v55  ;;  %v1786_v3 = vmul.f32 %v1666_v24, %v587_v37  ;;  %v594_v30 = vadd.f32 %v593_v44, %v592_v22  ;;  %v670_v8 = vrot.slane %v669_v47, 2 }
  0xd5   : > { %v664_v5 = vadd.f32 %v663_v45, %v662_v26  ;;  %v1791_v6 = vmul.f32 %v1666_v24, %v614_v57  ;;  %v691_v7 = vadd.f32 %v690_v60, %v689_v29  ;;  %v602_v12 = vrot.slane %v601_v32, 2  ;;  %v1809_v45 = vpop.permute.xlu1 %961 }
  0xd6   : > { %v725_v9 = vsel %vm724_vm3, %v1708_v55, %v723_v0  ;;  %v698_v11 = vmul.f32 %v1786_v3, %v1786_v3  ;;  %v595_v19 = vrot.slane %v594_v30, 1  ;;  %v675_v20 = vadd.f32 %v1757_v28, %v640_v2 }
  0xd7   : > { %v728_v13 = vsel %vm726_vm4, %v727_v31, %v725_v9  ;;  %v693_v14 = vmul.f32 %v664_v5, %v1666_v24  ;;  %v696_v59 = vmul.f32 %v691_v7, %v1666_v24  ;;  %v701_v16 = vmul.f32 %v1791_v6, %v1791_v6  ;;  %v1815_v60 = vpop.permute.xlu2 %907 }
  0xd8   : > { %v777_v17 = vadd.f32 0.001, %v728_v13  ;;  %v671_v23 = vadd.f32 %v670_v8, %v669_v47  ;;  %v596_v55 = vadd.f32 %v595_v19, %v594_v30  ;;  %v603_v26 = vadd.f32 %v602_v12, %v601_v32  ;;  %v1817_v2 = vpop.permute.xlu0 %956 }
  0xd9   : > { %v703_v21 = vsub.f32 %v693_v14, %v698_v11  ;;  %v706_v22 = vsub.f32 %v696_v59, %v701_v16  ;;  %v645_v46 = vmul.f32 %v1770_v49, %v1770_v49  ;;  %v817_v59 = vsub.f32 %v1658_v63, %v1669_v27 }
  0xda   : > { %1300 = vrcp.f32 %v777_v17  ;;  %v672_v37 = vrot.slane %v671_v23, 1  ;;  %v1807_v44 = vmul.f32 %v1666_v24, %v596_v55  ;;  %v604_v32 = vrot.slane %v603_v26, 1 }
  0xdb   : > { %v708_v29 = vmul.f32 1.032258, %v703_v21  ;;  %v711_v33 = vmul.f32 1.032258, %v706_v22  ;;  %v676_v31 = vadd.f32 %v675_v20, %v645_v46  ;;  %v802_v16 = vsub.f32 %v1641_v50, %v1669_v27 }
  0xdc   : > { %v673_v47 = vadd.f32 %v672_v37, %v671_v23  ;;  %v699_v30 = vmul.f32 %v1807_v44, %v1807_v44  ;;  %v605_v11 = vadd.f32 %v604_v32, %v603_v26  ;;  %v807_v21 = vsub.f32 %v1644_v52, %v1669_v27 }
  0xdd   : > { %v1811_v57 = vmax.f32 %v708_v29, 0.0  ;;  %v1813_v28 = vmax.f32 %v711_v33, 0.0  ;;  %v677_v0 = vrot.slane %v676_v31, 4  ;;  %v812_v46 = vsub.f32 %v1655_v61, %v1669_v27  ;;  %v1836_v29 = vpop.permute.xlu1 %1000 }
  0xde   : > { %v694_v8 = vmul.f32 %v673_v47, %v1666_v24  ;;  %v1832_v26 = vmul.f32 %v1666_v24, %v605_v11 }
  0xdf   : > { %1302 = vrsqrt.f32 %v1811_v57  ;;  %v678_v9 = vadd.f32 %v677_v0, %v676_v31  ;;  %v1839_v52 = vpop.permute.xlu2 %966  ;;  %vm736_vm5 = vcmp.eq.f32.partialorder %v1811_v57, inf  ;;  %vm738_vm6 = vcmp.eq.f32.partialorder %v1811_v57, 0.0 }
  0xe0   : > { %v1301_v5 = vpop.eup %1300  ;;  %1304 = vrsqrt.f32 %v1813_v28  ;;  %v704_v13 = vsub.f32 %v694_v8, %v699_v30  ;;  %vm772_vm7 = vcmp.eq.f32.partialorder %v1813_v28, inf  ;;  %vm774_vm8 = vcmp.eq.f32.partialorder %v1813_v28, 0.0 }
  0xe1   : > { %v787_v7 = vmul.f32 %v1301_v5, %v777_v17  ;;  %v679_v14 = vrot.slane %v678_v9, 2 }
  0xe2   : > { %v709_v22 = vmul.f32 1.032258, %v704_v13  ;;  %v700_v13 = vmul.f32 %v1832_v26, %v1832_v26 }
  0xe3   : > { %v792_v12 = vsub.f32 2.0, %v787_v7  ;;  %v680_v17 = vadd.f32 %v679_v14, %v678_v9  ;;  %v739_v9 = vand.u32 2147483648, %v1811_v57 }
  0xe4   : > { %v1841_v47 = vmax.f32 %v709_v22, 0.0 }
  0xe5   : > { %v1303_v19 = vpop.eup %1302  ;;  %v797_v20 = vmul.f32 %v1301_v5, %v792_v12  ;;  %v681_v32 = vrot.slane %v680_v17, 1  ;;  %v1844_v5 = vpop.permute.xlu0 %971 }
  0xe6   : > { %v1305_v23 = vpop.eup %1304  ;;  %v730_v55 = vmul.f32 %v1303_v19, %v1811_v57  ;;  %1306 = vrsqrt.f32 %v1841_v47  ;;  %vm748_vm9 = vcmp.eq.f32.partialorder %v1841_v47, inf  ;;  %vm750_vm10 = vcmp.eq.f32.partialorder %v1841_v47, 0.0 }
  0xe7   : > { %v837_v63 = vmul.f32 %v817_v59, %v797_v20  ;;  %v822_v50 = vmul.f32 %v802_v16, %v797_v20  ;;  %v766_v33 = vmul.f32 %v1305_v23, %v1813_v28  ;;  %v827_v37 = vmul.f32 %v807_v21, %v797_v20 }
  0xe8   : > { %v731_v31 = vmul.f32 %v1303_v19, %v730_v55  ;;  %v832_v0 = vmul.f32 %v812_v46, %v797_v20  ;;  %v682_v12 = vadd.f32 %v681_v32, %v680_v17 }
  0xe9   : > { %v881_v30 = vmul.f32 %v1753_v25, %v837_v63  ;;  %v866_v61 = vmul.f32 %v1699_v51, %v822_v50  ;;  %v767_v27 = vmul.f32 %v1305_v23, %v766_v33  ;;  %v871_v7 = vmul.f32 %v1760_v38, %v827_v37 }
  0xea   : > { %v732_v8 = vmul.f32 0.5, %v731_v31  ;;  %v876_v20 = vmul.f32 %v1767_v58, %v832_v0  ;;  %v695_v17 = vmul.f32 %v682_v12, %v1666_v24  ;;  %v775_v31 = vand.u32 2147483648, %v1813_v28 }
  0xeb   : > { %v768_v11 = vmul.f32 0.5, %v767_v27  ;;  %v910_v14 = vadd.f32 %v1780_v62, %v866_v61  ;;  %v925_v16 = vadd.f32 %v1815_v60, %v881_v30  ;;  %v915_v21 = vadd.f32 %v1788_v4, %v871_v7 }
  0xec   : > { %v733_v59 = vsub.f32 1.5, %v732_v8  ;;  %v920_v50 = vadd.f32 %v1777_v53, %v876_v20  ;;  %v705_v32 = vsub.f32 %v695_v17, %v700_v13  ;;  %v1307_v0 = vpop.eup %1306  ;;  %v1877_v13 = vpop.permute.xlu2 %1005 }
  0xed   : > { %v769_v22 = vsub.f32 1.5, %v768_v11  ;;  %v930_v55 = vmax.f32 %v910_v14, 0.0  ;;  %v945_v63 = vmax.f32 %v925_v16, 0.0  ;;  %v935_v33 = vmax.f32 %v915_v21, 0.0  ;;  %v1885_v21 = vpop.permute.xlu0 %1010 }
  0xee   : > { %v734_v46 = vmul.f32 %v1303_v19, %v733_v59  ;;  %v940_v7 = vmax.f32 %v920_v50, 0.0  ;;  %v1872_v19 = vpop.permute.xlu1 %1015  ;;  %v710_v11 = vmul.f32 1.032258, %v705_v32 }
  0xef   : > { %v770_v37 = vmul.f32 %v1305_v23, %v769_v22  ;;  %v974_v30 = vmul.f32 %v1817_v2, %v930_v55  ;;  %v989_v27 = vmul.f32 %v1844_v5, %v945_v63  ;;  %v979_v24 = vmul.f32 %v1809_v45, %v935_v33 }
  0xf0   : > { %v735_v61 = vmul.f32 %v734_v46, %v1811_v57  ;;  %v742_v23 = vmul.f32 %v1307_v0, %v1841_v47  ;;  %v984_v16 = vmul.f32 %v1839_v52, %v940_v7  ;;  %v1892_v46 = vmax.f32 %v710_v11, 0.0 }
  0xf1   : > { %v771_v8 = vmul.f32 %v770_v37, %v1813_v28  ;;  %v1018_v12 = vadd.f32 %v1836_v29, %v974_v30  ;;  %v1033_v59 = vadd.f32 %v1872_v19, %v989_v27  ;;  %v1023_v20 = vadd.f32 %v1877_v13, %v979_v24 }
  0xf2   : > { %v737_v14 = vsel %vm736_vm5, %v1811_v57, %v735_v61  ;;  %v743_v55 = vmul.f32 %v1307_v0, %v742_v23  ;;  %v1028_v57 = vadd.f32 %v1885_v21, %v984_v16  ;;  %1308 = vrsqrt.f32 %v1892_v46 }
  0xf3   : > { %v740_v22 = vsel %vm738_vm6, %v739_v9, %v737_v14  ;;  %v773_v17 = vsel %vm772_vm7, %v1813_v28, %v771_v8  ;;  %1038 = vst [vmem:[%s1895_s8] sm:$0xff] %v1018_v12  ;;  %v818_v30 = vsub.f32 %v1734_v10, %v1786_v3  ;;  %v821_v28 = vsub.f32 %v1742_v15, %v1791_v6 }
  0xf4   : > { %v778_v63 = vadd.f32 0.001, %v740_v22  ;;  %v776_v50 = vsel %vm774_vm8, %v775_v31, %v773_v17  ;;  %1053 = vst [vmem:[%s1895_s8 + $0x78] sm:$0xff] %v1033_v59  ;;  %v744_v33 = vmul.f32 0.5, %v743_v55  ;;  %v808_v31 = vsub.f32 %v1675_v34, %v1786_v3 }
  0xf5   : > { %v781_v9 = vadd.f32 0.001, %v776_v50  ;;  %1043 = vst [vmem:[%s1895_s8 + $0x28] sm:$0xff] %v1023_v20  ;;  %v811_v27 = vsub.f32 %v1680_v36, %v1791_v6  ;;  %v803_v10 = vsub.f32 %v1677_v35, %v1786_v3  ;;  %v806_v34 = vsub.f32 %v1682_v39, %v1791_v6 }
  0xf6   : > { %1310 = vrcp.f32 %v778_v63  ;;  %1048 = vst [vmem:[%s1895_s8 + $0x50] sm:$0xff] %v1028_v57  ;;  %v745_v37 = vsub.f32 1.5, %v744_v33  ;;  %v813_v59 = vsub.f32 %v1692_v43, %v1786_v3  ;;  %v819_v35 = vsub.f32 %v1765_v56, %v1807_v44 }
  0xf7   : > { %1312 = vrcp.f32 %v781_v9  ;;  %v804_v22 = vsub.f32 %v1684_v40, %v1807_v44  ;;  %v816_v39 = vsub.f32 %v1697_v48, %v1791_v6  ;;  %vm760_vm11 = vcmp.eq.f32.partialorder %v1892_v46, inf }
  0xf8   : > { %v746_v32 = vmul.f32 %v1307_v0, %v745_v37  ;;  %v1309_v61 = vpop.eup %1308  ;;  %v751_v0 = vand.u32 2147483648, %v1841_v47  ;;  %v809_v43 = vsub.f32 %v1689_v42, %v1807_v44  ;;  %vm762_vm12 = vcmp.eq.f32.partialorder %v1892_v46, 0.0 }
  0xf9   : > { %v754_v8 = vmul.f32 %v1309_v61, %v1892_v46  ;;  %v763_v40 = vand.u32 2147483648, %v1892_v46 }
  0xfa   : > { %v747_v7 = vmul.f32 %v746_v32, %v1841_v47 }
  0xfb   : > { %v755_v14 = vmul.f32 %v1309_v61, %v754_v8 }
  0xfc   : > { %v1311_v24 = vpop.eup %1310  ;;  %v749_v11 = vsel %vm748_vm9, %v1841_v47, %v747_v7  ;;  %v814_v47 = vsub.f32 %v1723_v1, %v1807_v44 }
  0xfd   : > { %v1313_v23 = vpop.eup %1312  ;;  %v788_v15 = vmul.f32 %v1311_v24, %v778_v63  ;;  %v752_v12 = vsel %vm750_vm10, %v751_v0, %v749_v11  ;;  %v756_v55 = vmul.f32 0.5, %v755_v14 }
  0xfe   : > { %v791_v36 = vmul.f32 %v1313_v23, %v781_v9  ;;  %v779_v20 = vadd.f32 0.001, %v752_v12 }
  0xff   : > { %v793_v16 = vsub.f32 2.0, %v788_v15  ;;  %v757_v56 = vsub.f32 1.5, %v756_v55 }
 0x100   : > { %v796_v17 = vsub.f32 2.0, %v791_v36  ;;  %1314 = vrcp.f32 %v779_v20 }
 0x101   : > { %v798_v63 = vmul.f32 %v1311_v24, %v793_v16  ;;  %v758_v48 = vmul.f32 %v1309_v61, %v757_v56 }
 0x102   : > { %v801_v3 = vmul.f32 %v1313_v23, %v796_v17 }
 0x103   : > { %v838_v50 = vmul.f32 %v818_v30, %v798_v63  ;;  %v828_v57 = vmul.f32 %v808_v31, %v798_v63  ;;  %v823_v9 = vmul.f32 %v803_v10, %v798_v63  ;;  %v833_v1 = vmul.f32 %v813_v59, %v798_v63 }
 0x104   : > { %v841_v33 = vmul.f32 %v821_v28, %v801_v3  ;;  %v831_v37 = vmul.f32 %v811_v27, %v801_v3  ;;  %v826_v6 = vmul.f32 %v806_v34, %v801_v3  ;;  %v836_v44 = vmul.f32 %v816_v39, %v801_v3 }
 0x105   : > { %v882_v32 = vmul.f32 %v1753_v25, %v838_v50  ;;  %v872_v7 = vmul.f32 %v1760_v38, %v828_v57  ;;  %v867_v42 = vmul.f32 %v1699_v51, %v823_v9  ;;  %v759_v30 = vmul.f32 %v758_v48, %v1892_v46 }
 0x106   : > { %v885_v24 = vmul.f32 %v1753_v25, %v841_v33  ;;  %v875_v0 = vmul.f32 %v1760_v38, %v831_v37  ;;  %v870_v31 = vmul.f32 %v1699_v51, %v826_v6  ;;  %v1315_v8 = vpop.eup %1314  ;;  %v877_v27 = vmul.f32 %v1767_v58, %v833_v1 }
 0x107   : > { %v911_v28 = vadd.f32 %v1780_v62, %v867_v42  ;;  %v926_v61 = vadd.f32 %v1815_v60, %v882_v32  ;;  %v880_v10 = vmul.f32 %v1767_v58, %v836_v44  ;;  %v789_v23 = vmul.f32 %v1315_v8, %v779_v20 }
 0x108   : > { %v761_v15 = vsel %vm760_vm11, %v1892_v46, %v759_v30  ;;  %v914_v11 = vadd.f32 %v1780_v62, %v870_v31  ;;  %v929_v34 = vadd.f32 %v1815_v60, %v885_v24  ;;  %v921_v59 = vadd.f32 %v1777_v53, %v877_v27 }
 0x109   : > { %v764_v36 = vsel %vm762_vm12, %v763_v40, %v761_v15  ;;  %v931_v12 = vmax.f32 %v911_v28, 0.0  ;;  %v946_v14 = vmax.f32 %v926_v61, 0.0  ;;  %v794_v16 = vsub.f32 2.0, %v789_v23 }
 0x10a   : > { %v780_v17 = vadd.f32 0.001, %v764_v36  ;;  %v934_v55 = vmax.f32 %v914_v11, 0.0  ;;  %v949_v39 = vmax.f32 %v929_v34, 0.0  ;;  %v924_v3 = vadd.f32 %v1777_v53, %v880_v10 }
 0x10b   : > { %v975_v20 = vmul.f32 %v1817_v2, %v931_v12  ;;  %v990_v63 = vmul.f32 %v1844_v5, %v946_v14  ;;  %v941_v56 = vmax.f32 %v921_v59, 0.0  ;;  %v799_v50 = vmul.f32 %v1315_v8, %v794_v16 }
 0x10c   : > { %1316 = vrcp.f32 %v780_v17  ;;  %v978_v46 = vmul.f32 %v1817_v2, %v934_v55  ;;  %v993_v40 = vmul.f32 %v1844_v5, %v949_v39  ;;  %v944_v1 = vmax.f32 %v924_v3, 0.0 }
 0x10d   : > { %v1019_v57 = vadd.f32 %v1836_v29, %v975_v20  ;;  %v1034_v9 = vadd.f32 %v1872_v19, %v990_v63  ;;  %v985_v33 = vmul.f32 %v1839_v52, %v941_v56  ;;  %v839_v37 = vmul.f32 %v819_v35, %v799_v50 }
 0x10e   : > { %v824_v48 = vmul.f32 %v804_v22, %v799_v50  ;;  %v1022_v6 = vadd.f32 %v1836_v29, %v978_v46  ;;  %v1037_v32 = vadd.f32 %v1872_v19, %v993_v40  ;;  %v834_v42 = vmul.f32 %v814_v47, %v799_v50 }
 0x10f   : > { %1039 = vst [vmem:[%s1895_s8 + $0x8] sm:$0xff] %v1019_v57  ;;  %v988_v44 = vmul.f32 %v1839_v52, %v944_v1  ;;  %v1029_v24 = vadd.f32 %v1885_v21, %v985_v33  ;;  %v829_v30 = vmul.f32 %v809_v43, %v799_v50  ;;  %v883_v31 = vmul.f32 %v1753_v25, %v839_v37 }
 0x110   : > { %v868_v8 = vmul.f32 %v1699_v51, %v824_v48  ;;  %1042 = vst [vmem:[%s1895_s8 + $0x20] sm:$0xff] %v1022_v6  ;;  %v916_v35 = vadd.f32 %v1788_v4, %v872_v7  ;;  %v919_v22 = vadd.f32 %v1788_v4, %v875_v0  ;;  %v878_v28 = vmul.f32 %v1767_v58, %v834_v42 }
 0x111   : > { %1054 = vst [vmem:[%s1895_s8 + $0x80] sm:$0xff] %v1034_v9  ;;  %v1032_v47 = vadd.f32 %v1885_v21, %v988_v44  ;;  %v873_v61 = vmul.f32 %v1760_v38, %v829_v30  ;;  %v927_v10 = vadd.f32 %v1815_v60, %v883_v31  ;;  %v820_v7 = vsub.f32 %v1770_v49, %v1832_v26 }
 0x112   : > { %v1317_v27 = vpop.eup %1316  ;;  %v912_v43 = vadd.f32 %v1780_v62, %v868_v8  ;;  %1057 = vst [vmem:[%s1895_s8 + $0x98] sm:$0xff] %v1037_v32  ;;  %v936_v23 = vmax.f32 %v916_v35, 0.0  ;;  %v939_v15 = vmax.f32 %v919_v22, 0.0  ;;  %v922_v0 = vadd.f32 %v1777_v53, %v878_v28 }
 0x113   : > { %v790_v11 = vmul.f32 %v1317_v27, %v780_v17  ;;  %1049 = vst [vmem:[%s1895_s8 + $0x58] sm:$0xff] %v1029_v24  ;;  %v917_v34 = vadd.f32 %v1788_v4, %v873_v61  ;;  %v947_v12 = vmax.f32 %v927_v10, 0.0  ;;  %v805_v17 = vsub.f32 %v1686_v41, %v1832_v26 }
 0x114   : > { %v932_v36 = vmax.f32 %v912_v43, 0.0  ;;  %1052 = vst [vmem:[%s1895_s8 + $0x70] sm:$0xff] %v1032_v47  ;;  %v980_v14 = vmul.f32 %v1809_v45, %v936_v23  ;;  %v983_v59 = vmul.f32 %v1809_v45, %v939_v15  ;;  %v942_v55 = vmax.f32 %v922_v0, 0.0 }
 0x115   : > { %v795_v16 = vsub.f32 2.0, %v790_v11  ;;  %v937_v39 = vmax.f32 %v917_v34, 0.0  ;;  %v991_v20 = vmul.f32 %v1844_v5, %v947_v12  ;;  %v815_v50 = vsub.f32 %v1745_v18, %v1832_v26 }
 0x116   : > { %v976_v49 = vmul.f32 %v1817_v2, %v932_v36  ;;  %v1024_v63 = vadd.f32 %v1877_v13, %v980_v14  ;;  %v1027_v3 = vadd.f32 %v1877_v13, %v983_v59  ;;  %v986_v46 = vmul.f32 %v1839_v52, %v942_v55 }
 0x117   : > { %v800_v56 = vmul.f32 %v1317_v27, %v795_v16  ;;  %v981_v41 = vmul.f32 %v1809_v45, %v937_v39  ;;  %v1035_v57 = vadd.f32 %v1872_v19, %v991_v20  ;;  %v810_v9 = vsub.f32 %v1706_v54, %v1832_v26 }
 0x118   : > { %v1020_v40 = vadd.f32 %v1836_v29, %v976_v49  ;;  %1044 = vst [vmem:[%s1895_s8 + $0x30] sm:$0xff] %v1024_v63  ;;  %v1030_v18 = vadd.f32 %v1885_v21, %v986_v46 }
 0x119   : > { %v840_v1 = vmul.f32 %v820_v7, %v800_v56  ;;  %v825_v33 = vmul.f32 %v805_v17, %v800_v56  ;;  %v835_v37 = vmul.f32 %v815_v50, %v800_v56  ;;  %1047 = vst [vmem:[%s1895_s8 + $0x48] sm:$0xff] %v1027_v3  ;;  %v830_v48 = vmul.f32 %v810_v9, %v800_v56 }
 0x11a   : > { %1040 = vst [vmem:[%s1895_s8 + $0x10] sm:$0xff] %v1020_v40  ;;  %v1025_v6 = vadd.f32 %v1877_v13, %v981_v41 }
 0x11b   : > { %v884_v32 = vmul.f32 %v1753_v25, %v840_v1  ;;  %v869_v42 = vmul.f32 %v1699_v51, %v825_v33  ;;  %1055 = vst [vmem:[%s1895_s8 + $0x88] sm:$0xff] %v1035_v57  ;;  %v879_v44 = vmul.f32 %v1767_v58, %v835_v37  ;;  %v874_v54 = vmul.f32 %v1760_v38, %v830_v48 }
 0x11c   : > { %1050 = vst [vmem:[%s1895_s8 + $0x60] sm:$0xff] %v1030_v18 }
 0x11d   : > { %v913_v26 = vadd.f32 %v1780_v62, %v869_v42  ;;  %v928_v24 = vadd.f32 %v1815_v60, %v884_v32  ;;  %v923_v30 = vadd.f32 %v1777_v53, %v879_v44  ;;  %1045 = vst [vmem:[%s1895_s8 + $0x38] sm:$0xff] %v1025_v6  ;;  %v918_v31 = vadd.f32 %v1788_v4, %v874_v54 }
 0x11f   : > { %v933_v25 = vmax.f32 %v913_v26, 0.0  ;;  %v948_v51 = vmax.f32 %v928_v24, 0.0  ;;  %v943_v8 = vmax.f32 %v923_v30, 0.0  ;;  %v938_v38 = vmax.f32 %v918_v31, 0.0 }
 0x121   : > { %v977_v58 = vmul.f32 %v1817_v2, %v933_v25  ;;  %v992_v53 = vmul.f32 %v1844_v5, %v948_v51  ;;  %v987_v62 = vmul.f32 %v1839_v52, %v943_v8  ;;  %v982_v4 = vmul.f32 %v1809_v45, %v938_v38 }
 0x123   : > { %v1021_v60 = vadd.f32 %v1836_v29, %v977_v58  ;;  %v1036_v35 = vadd.f32 %v1872_v19, %v992_v53  ;;  %v1031_v22 = vadd.f32 %v1885_v21, %v987_v62  ;;  %v1026_v28 = vadd.f32 %v1877_v13, %v982_v4 }
 0x125   : > { %1041 = vst [vmem:[%s1895_s8 + $0x18] sm:$0xff] %v1021_v60 }
 0x126   : > { %1056 = vst [vmem:[%s1895_s8 + $0x90] sm:$0xff] %v1036_v35 }
 0x127   : > { %1051 = vst [vmem:[%s1895_s8 + $0x68] sm:$0xff] %v1031_v22 }
 0x128   : > { %1046 = vst [vmem:[%s1895_s8 + $0x40] sm:$0xff] %v1026_v28 }
 0x129   : > { %1345 = shalt.err (!%p1342_p5)
}
 0x12a   : > { %s1400_s20 = smov 640   ;;  %s1401_s8 = smov 40  }
 0x12b   : > { %1234 = dma.vmem_to_hbm [thread:$0]  (%p1482_p4), %s1074_s19, 2560, %s1076_s16, %s1059_s23, %s1400_s20, %s1400_s20, %s1401_s8  }
 0x12c PF: > { %p1240_p6 = scmp.ge.s32.totalorder %s1396_s29, 2  ;;  %s1090_s15 = sand.u32 1, %s1376_s24  }
 0x12d   : > { %s1091_s27 = scalar_lea.sflag [#allocation3], %s1090_s15 }
 0x12e   : > { %p1237_p7 = pnand %p1240_p6, %p1489_p8 }
 0x130   : > { %p1238_p9 = pneg %p1237_p7 }
 0x132   : > { %1371 = dma.done.wait (%p1238_p9), %s1091_s27, 2560  }
 0x133   : > { %1373 = vsyncadd (%p1238_p9), %s1091_s27, 4294964736  ;;  %s20_s29 = sadd.s32 1, %s1396_s29   ;;  %s2081_s24 = smov %s1380_s25 }
 0x134   : > { %p17_p10 = scmp.ge.s32.totalorder %s20_s29, 4   ;;  %s2082_s25 = smov %s1384_s26 }
 0x135   : > { %s2083_s26 = smov %s1495_s14  ;;  %s2084_s27 = smov %s1392_s28 }
 0x136   : > { %s2085_s28 = smov %s2087_s9  ;;  %19 = sbr.rel (!%p17_p10) target bundleno = 4 (0x4), region = 89 }
 0x13b   :  { %1097 = vsyncpa [#allocation3], 1 }
 0x13c   :  { %1099 = vsyncpa [#allocation3 + $0x1], 1 }

</bundles_post_ra>
